<compile_context>
chip_gen: v5e
topology: v5e:2x2
jax: 0.10.0
libtpu: 0.0.40
codegen_flags: <defaults>
</compile_context>

<pallas_src>
import functools

import jax
import jax.numpy as jnp
from jax.experimental import pallas as pl
from jax.experimental.pallas import tpu as pltpu


N_PAD = 128  # lane-dense output slab width (>= act_dim)


# ----------------------------------------------------------------------------
# Fused Pallas kernel
# ----------------------------------------------------------------------------
def fused_actor_kernel(obs_ref, u_ref, expand_ref, mr_ref,
                       w1_ref, b1_ref, w2_ref, b2_ref, w3_ref, b3_ref,
                       out_ref, *, inv_two_std2):
    """Gaussian receptive-field encoding + stochastic spikes -> SpikeMLP
    (spike_ts repeat pre-folded into W1) -> pooled decode (pre-folded into W3,
    padded lanes pre-masked via -inf bias) -> stable softmax.
    One batch tile per grid step, all operands resident in VMEM."""
    # --- encoder ---------------------------------------------------------
    # obs_e[b, o*P + p] = obs[b, o]   (on-chip lane expansion via 0/1 matmul)
    obs_e = jnp.dot(obs_ref[...], expand_ref[...],
                    preferred_element_type=jnp.float32)
    diff = obs_e - mr_ref[...]
    gaussian = jnp.exp(-(diff * diff) * inv_two_std2)          # EUP exp
    spikes = (u_ref[...] < gaussian).astype(jnp.float32)

    # --- SpikeMLP (W1 already summed over spike_ts and permuted to (o,p)) --
    h = jnp.dot(spikes, w1_ref[...],
                preferred_element_type=jnp.float32) + b1_ref[...]
    h = jnp.maximum(h, 0.0)
    h = jnp.dot(h, w2_ref[...],
                preferred_element_type=jnp.float32) + b2_ref[...]
    h = jnp.maximum(h, 0.0)

    # --- decoder folded into W3 (pooled, lane-padded; pad lanes bias=-inf) --
    mu = jnp.dot(h, w3_ref[...],
                 preferred_element_type=jnp.float32) + b3_ref[...]

    # stable softmax; padded lanes already carry -inf -> exp() == 0 exactly
    m = jnp.max(mu, axis=-1, keepdims=True)
    e = jnp.exp(mu - m)                                        # EUP exp
    denom = jnp.sum(e, axis=-1, keepdims=True)
    out_ref[...] = e * pl.reciprocal(denom, approx=False)


# ----------------------------------------------------------------------------
# Wrapper (algebraic folding of repeat/permute/pooling + batch tiling)
# ----------------------------------------------------------------------------
def spiking_actor_forward(obs, uniform, params, *, en_pop_dim, de_pop_dim,
                          act_dim, spike_ts, mean_range, std, tile_b=256):
    B, obs_dim = obs.shape
    P = en_pop_dim
    OP = obs_dim * P

    # ---- fold spike_ts repeat + (0,2,1) permute into W1 (exact) ----
    # torch flattening of spikes is (p, o, t); x @ W1 == spikes_(o,p) @ W1_folded
    w1 = params["w1"]                                   # (P*O*T, H1)
    H1 = w1.shape[1]
    w1f = (w1.reshape(P, obs_dim, spike_ts, H1)
             .sum(axis=2)                               # sum over spike_ts
             .transpose(1, 0, 2)                        # (o, p, H1)
             .reshape(OP, H1))

    # ---- fold population-mean decode into W3 (exact, linear) ----
    pool = (jnp.kron(jnp.eye(act_dim, dtype=jnp.float32),
                     jnp.ones((de_pop_dim, 1), dtype=jnp.float32)) / de_pop_dim)
    w3p = params["w3"] @ pool                           # (H2, act_dim)
    b3p = params["b3"] @ pool                           # (1, act_dim)
    # lane-dense output slab: pad N to 128; padded-lane mask baked into bias
    w3p = jnp.pad(w3p, ((0, 0), (0, N_PAD - act_dim)))
    b3p = jnp.concatenate(
        [b3p, jnp.full((1, N_PAD - act_dim), -jnp.inf, jnp.float32)], axis=1)

    # ---- small resident constants (no batch broadcast in HBM) ----
    mr = jnp.linspace(-mean_range, mean_range, P, dtype=jnp.float32)
    mr_row = jnp.tile(mr, obs_dim)[None, :]                         # (1, O*P)
    expand = jnp.kron(jnp.eye(obs_dim, dtype=jnp.float32),
                      jnp.ones((1, P), dtype=jnp.float32))          # (O, O*P)

    # ---- batch tiling (multiple of 8 sublanes; pad & slice) ----
    TILE_B = min(tile_b, max(8, ((B + 7) // 8) * 8))
    B_pad = pl.cdiv(B, TILE_B) * TILE_B
    obs_p = jnp.pad(obs, ((0, B_pad - B), (0, 0)))
    u2 = jnp.pad(uniform.reshape(B, OP), ((0, B_pad - B), (0, 0)))

    grid = (B_pad // TILE_B,)
    batch_spec = lambda cols: pl.BlockSpec((TILE_B, cols), lambda i: (i, 0))
    resident = lambda a: pl.BlockSpec(a.shape, lambda i: (0, 0))

    kernel = functools.partial(fused_actor_kernel,
                               inv_two_std2=1.0 / (2.0 * std * std))

    out = pl.pallas_call(
        kernel,
        out_shape=jax.ShapeDtypeStruct((B_pad, N_PAD), jnp.float32),
        grid=grid,
        in_specs=[
            batch_spec(obs_dim),        # obs             (batch-tiled)
            batch_spec(OP),             # uniform noise   (batch-tiled)
            resident(expand),           # obs->(o,p) expansion matrix
            resident(mr_row),           # mean_range row
            resident(w1f), resident(params["b1"]),
            resident(params["w2"]), resident(params["b2"]),
            resident(w3p), resident(b3p),
        ],
        out_specs=pl.BlockSpec((TILE_B, N_PAD), lambda i: (i, 0)),
        compiler_params=pltpu.CompilerParams(
            dimension_semantics=("parallel",)),
    )(obs_p, u2, expand, mr_row, w1f, params["b1"], params["w2"],
      params["b2"], w3p, b3p)

    # slice off batch padding and lane padding
    return out[:B, :act_dim], None   # matches (F.softmax(mu, dim=-1), None)


# ----------------------------------------------------------------------------
# Pure-JAX reference (unfolded, mirrors the PyTorch module)
# ----------------------------------------------------------------------------
def reference_forward(obs, uniform, params, *, en_pop_dim, de_pop_dim, act_dim,
                      spike_ts, mean_range, std):
    B, obs_dim = obs.shape
    mr = jnp.linspace(-mean_range, mean_range, en_pop_dim, dtype=jnp.float32)
    gaussian = jnp.exp(-((obs[:, :, None] - mr[None, None, :]) ** 2) / (2 * std ** 2))
    spikes = (uniform < gaussian).astype(jnp.float32)
    spikes = jnp.repeat(spikes.transpose(0, 2, 1)[..., None], spike_ts, axis=-1)
    x = spikes.reshape(B, -1)
    h = jax.nn.relu(x @ params["w1"] + params["b1"])
    h = jax.nn.relu(h @ params["w2"] + params["b2"])
    out = h @ params["w3"] + params["b3"]
    mu = out.reshape(B, act_dim, de_pop_dim).mean(axis=-1)
    return jax.nn.softmax(mu, axis=-1)


# ----------------------------------------------------------------------------
if __name__ == "__main__":
    B, obs_dim, act_dim = 2, 4, 4
    en_pop_dim, de_pop_dim = 8, 8
    hidden_sizes = (32, 32)
    mean_range, std, spike_ts = 1.0, 0.5, 4

    in_size = obs_dim * en_pop_dim * spike_ts        # 128
    out_size = act_dim * de_pop_dim                  # 32

    key = jax.random.PRNGKey(0)
    ks = jax.random.split(key, 9)
    obs = jax.random.normal(ks[0], (B, obs_dim), jnp.float32)
    uniform = jax.random.uniform(ks[1], (B, obs_dim, en_pop_dim), jnp.float32)

    # Linear weights stored as (in, out) so kernels compute x @ W + b
    # (equivalent to torch's x @ W.T + b).
    params = {
        "w1": jax.random.normal(ks[2], (in_size, hidden_sizes[0]), jnp.float32) * 0.1,
        "b1": jax.random.normal(ks[3], (1, hidden_sizes[0]), jnp.float32) * 0.01,
        "w2": jax.random.normal(ks[4], (hidden_sizes[0], hidden_sizes[1]), jnp.float32) * 0.1,
        "b2": jax.random.normal(ks[5], (1, hidden_sizes[1]), jnp.float32) * 0.01,
        "w3": jax.random.normal(ks[6], (hidden_sizes[1], out_size), jnp.float32) * 0.1,
        "b3": jax.random.normal(ks[7], (1, out_size), jnp.float32) * 0.01,
    }
    # log_std parameter exists in the module but does not affect forward()
    log_std = -0.5 * jnp.ones((act_dim,), jnp.float32)  # unused in forward

    kwargs = dict(en_pop_dim=en_pop_dim, de_pop_dim=de_pop_dim, act_dim=act_dim,
                  spike_ts=spike_ts, mean_range=mean_range, std=std)

    probs, extra = spiking_actor_forward(obs, uniform, params, **kwargs)
    probs = jax.block_until_ready(probs)

    ref = jax.block_until_ready(reference_forward(obs, uniform, params, **kwargs))
    assert probs.shape == (B, act_dim)
    assert extra is None
    assert jnp.allclose(probs, ref, atol=1e-5, rtol=1e-5), (probs, ref)
    assert jnp.allclose(probs.sum(axis=-1), 1.0, atol=1e-5)

    print("KERNEL_OK")
</pallas_src>

<mosaic_0001>
module attributes {stable_mosaic.version = 11 : i64} {
  func.func @fused_actor_kernel(%arg0: i32, %arg1: memref<8x4xf32, #tpu.memory_space<vmem>>, %arg2: memref<8x32xf32, #tpu.memory_space<vmem>>, %arg3: memref<4x32xf32, #tpu.memory_space<vmem>>, %arg4: memref<1x32xf32, #tpu.memory_space<vmem>>, %arg5: memref<32x32xf32, #tpu.memory_space<vmem>>, %arg6: memref<1x32xf32, #tpu.memory_space<vmem>>, %arg7: memref<32x32xf32, #tpu.memory_space<vmem>>, %arg8: memref<1x32xf32, #tpu.memory_space<vmem>>, %arg9: memref<32x128xf32, #tpu.memory_space<vmem>>, %arg10: memref<1x128xf32, #tpu.memory_space<vmem>>, %arg11: memref<8x128xf32, #tpu.memory_space<vmem>>) attributes {dimension_semantics = [#tpu.dimension_semantics<parallel>], iteration_bounds = array<i64: 1>, scalar_prefetch = 0 : i64, scratch_operands = 0 : i64, tpu.core_type = #tpu.core_type<tc>, window_params = [{transform_indices = @transform_0, window_bounds = array<i64: 8, 4>}, {transform_indices = @transform_1, window_bounds = array<i64: 8, 32>}, {pipeline_mode = #tpu.pipeline_mode<synchronous>, transform_indices = @transform_2, window_bounds = array<i64: 4, 32>}, {pipeline_mode = #tpu.pipeline_mode<synchronous>, transform_indices = @transform_3, window_bounds = array<i64: 1, 32>}, {pipeline_mode = #tpu.pipeline_mode<synchronous>, transform_indices = @transform_4, window_bounds = array<i64: 32, 32>}, {pipeline_mode = #tpu.pipeline_mode<synchronous>, transform_indices = @transform_5, window_bounds = array<i64: 1, 32>}, {pipeline_mode = #tpu.pipeline_mode<synchronous>, transform_indices = @transform_6, window_bounds = array<i64: 32, 32>}, {pipeline_mode = #tpu.pipeline_mode<synchronous>, transform_indices = @transform_7, window_bounds = array<i64: 1, 32>}, {pipeline_mode = #tpu.pipeline_mode<synchronous>, transform_indices = @transform_8, window_bounds = array<i64: 32, 128>}, {pipeline_mode = #tpu.pipeline_mode<synchronous>, transform_indices = @transform_9, window_bounds = array<i64: 1, 128>}, {transform_indices = @transform_10, window_bounds = array<i64: 8, 128>}]} {
    %c0 = arith.constant 0 : index
    %c0_0 = arith.constant 0 : index
    %0 = vector.load %arg1[%c0, %c0_0] : memref<8x4xf32, #tpu.memory_space<vmem>>, vector<8x4xf32>
    %c0_1 = arith.constant 0 : index
    %c0_2 = arith.constant 0 : index
    %1 = vector.load %arg3[%c0_1, %c0_2] : memref<4x32xf32, #tpu.memory_space<vmem>>, vector<4x32xf32>
    %cst = arith.constant dense<0.000000e+00> : vector<8x32xf32>
    %2 = tpu.matmul %0, %1, %cst {dimension_numbers = #tpu.dot_dimension_numbers<[1], [0], [0], [1], [0, 0, 1, 1], [], []>} : vector<8x4xf32>, vector<4x32xf32>, vector<8x32xf32> -> vector<8x32xf32>
    %c0_3 = arith.constant 0 : index
    %c0_4 = arith.constant 0 : index
    %3 = vector.load %arg4[%c0_3, %c0_4] : memref<1x32xf32, #tpu.memory_space<vmem>>, vector<1x32xf32>
    %4 = vector.broadcast %3 : vector<1x32xf32> to vector<8x32xf32>
    %5 = arith.subf %2, %4 : vector<8x32xf32>
    %6 = arith.mulf %5, %5 : vector<8x32xf32>
    %cst_5 = arith.constant 0.000000e+00 : f32
    %7 = vector.broadcast %cst_5 : f32 to vector<8x32xf32>
    %8 = arith.subf %7, %6 : vector<8x32xf32>
    %cst_6 = arith.constant 2.000000e+00 : f32
    %9 = vector.broadcast %cst_6 : f32 to vector<8x32xf32>
    %10 = arith.mulf %8, %9 : vector<8x32xf32>
    %11 = math.exp %10 : vector<8x32xf32>
    %c0_7 = arith.constant 0 : index
    %c0_8 = arith.constant 0 : index
    %12 = vector.load %arg2[%c0_7, %c0_8] : memref<8x32xf32, #tpu.memory_space<vmem>>, vector<8x32xf32>
    %13 = arith.cmpf olt, %12, %11 : vector<8x32xf32>
    %14 = arith.extui %13 : vector<8x32xi1> to vector<8x32xi32>
    %15 = arith.sitofp %14 : vector<8x32xi32> to vector<8x32xf32>
    %c0_9 = arith.constant 0 : index
    %c0_10 = arith.constant 0 : index
    %16 = vector.load %arg5[%c0_9, %c0_10] : memref<32x32xf32, #tpu.memory_space<vmem>>, vector<32x32xf32>
    %cst_11 = arith.constant dense<0.000000e+00> : vector<8x32xf32>
    %17 = tpu.matmul %15, %16, %cst_11 {dimension_numbers = #tpu.dot_dimension_numbers<[1], [0], [0], [1], [0, 0, 1, 1], [], []>} : vector<8x32xf32>, vector<32x32xf32>, vector<8x32xf32> -> vector<8x32xf32>
    %c0_12 = arith.constant 0 : index
    %c0_13 = arith.constant 0 : index
    %18 = vector.load %arg6[%c0_12, %c0_13] : memref<1x32xf32, #tpu.memory_space<vmem>>, vector<1x32xf32>
    %19 = vector.broadcast %18 : vector<1x32xf32> to vector<8x32xf32>
    %20 = arith.addf %17, %19 : vector<8x32xf32>
    %cst_14 = arith.constant 0.000000e+00 : f32
    %21 = vector.broadcast %cst_14 : f32 to vector<8x32xf32>
    %22 = arith.maximumf %20, %21 : vector<8x32xf32>
    %c0_15 = arith.constant 0 : index
    %c0_16 = arith.constant 0 : index
    %23 = vector.load %arg7[%c0_15, %c0_16] : memref<32x32xf32, #tpu.memory_space<vmem>>, vector<32x32xf32>
    %cst_17 = arith.constant dense<0.000000e+00> : vector<8x32xf32>
    %24 = tpu.matmul %22, %23, %cst_17 {dimension_numbers = #tpu.dot_dimension_numbers<[1], [0], [0], [1], [0, 0, 1, 1], [], []>} : vector<8x32xf32>, vector<32x32xf32>, vector<8x32xf32> -> vector<8x32xf32>
    %c0_18 = arith.constant 0 : index
    %c0_19 = arith.constant 0 : index
    %25 = vector.load %arg8[%c0_18, %c0_19] : memref<1x32xf32, #tpu.memory_space<vmem>>, vector<1x32xf32>
    %26 = vector.broadcast %25 : vector<1x32xf32> to vector<8x32xf32>
    %27 = arith.addf %24, %26 : vector<8x32xf32>
    %cst_20 = arith.constant 0.000000e+00 : f32
    %28 = vector.broadcast %cst_20 : f32 to vector<8x32xf32>
    %29 = arith.maximumf %27, %28 : vector<8x32xf32>
    %c0_21 = arith.constant 0 : index
    %c0_22 = arith.constant 0 : index
    %30 = vector.load %arg9[%c0_21, %c0_22] : memref<32x128xf32, #tpu.memory_space<vmem>>, vector<32x128xf32>
    %cst_23 = arith.constant dense<0.000000e+00> : vector<8x128xf32>
    %31 = tpu.matmul %29, %30, %cst_23 {dimension_numbers = #tpu.dot_dimension_numbers<[1], [0], [0], [1], [0, 0, 1, 1], [], []>} : vector<8x32xf32>, vector<32x128xf32>, vector<8x128xf32> -> vector<8x128xf32>
    %c0_24 = arith.constant 0 : index
    %c0_25 = arith.constant 0 : index
    %32 = vector.load %arg10[%c0_24, %c0_25] : memref<1x128xf32, #tpu.memory_space<vmem>>, vector<1x128xf32>
    %33 = vector.broadcast %32 : vector<1x128xf32> to vector<8x128xf32>
    %34 = arith.addf %31, %33 : vector<8x128xf32>
    %cst_26 = arith.constant dense<0xFF800000> : vector<8xf32>
    %35 = vector.multi_reduction <maximumf>, %34, %cst_26 [1] : vector<8x128xf32> to vector<8xf32>
    %36 = vector.shape_cast %35 : vector<8xf32> to vector<8x1xf32>
    %37 = vector.broadcast %36 : vector<8x1xf32> to vector<8x128xf32>
    %38 = arith.subf %34, %37 : vector<8x128xf32>
    %39 = math.exp %38 : vector<8x128xf32>
    %cst_27 = arith.constant dense<0.000000e+00> : vector<8xf32>
    %40 = vector.multi_reduction <add>, %39, %cst_27 [1] : vector<8x128xf32> to vector<8xf32>
    %41 = vector.shape_cast %40 : vector<8xf32> to vector<8x1xf32>
    %42 = tpu.reciprocal %41 : vector<8x1xf32> -> vector<8x1xf32>
    %43 = vector.broadcast %42 : vector<8x1xf32> to vector<8x128xf32>
    %44 = arith.mulf %39, %43 : vector<8x128xf32>
    %c0_28 = arith.constant 0 : index
    %c0_29 = arith.constant 0 : index
    %45 = vector.load %arg11[%c0_28, %c0_29] : memref<8x128xf32, #tpu.memory_space<vmem>>, vector<8x128xf32>
    tpu.vector_store %arg11[%c0_28, %c0_29], %44 {strides = array<i32>} : memref<8x128xf32, #tpu.memory_space<vmem>>, vector<8x128xf32>,
    return
  }
  func.func @transform_0(%arg0: i32) -> (i32, i32) {
    %c0_i32 = arith.constant 0 : i32
    %c0_i32_0 = arith.constant 0 : i32
    return %arg0, %c0_i32 : i32, i32
  }
  func.func @transform_1(%arg0: i32) -> (i32, i32) {
    %c0_i32 = arith.constant 0 : i32
    %c0_i32_0 = arith.constant 0 : i32
    return %arg0, %c0_i32 : i32, i32
  }
  func.func @transform_2(%arg0: i32) -> (i32, i32) {
    %c0_i32 = arith.constant 0 : i32
    %c0_i32_0 = arith.constant 0 : i32
    %c0_i32_1 = arith.constant 0 : i32
    return %c0_i32, %c0_i32_0 : i32, i32
  }
  func.func @transform_3(%arg0: i32) -> (i32, i32) {
    %c0_i32 = arith.constant 0 : i32
    %c0_i32_0 = arith.constant 0 : i32
    %c0_i32_1 = arith.constant 0 : i32
    return %c0_i32, %c0_i32_0 : i32, i32
  }
  func.func @transform_4(%arg0: i32) -> (i32, i32) {
    %c0_i32 = arith.constant 0 : i32
    %c0_i32_0 = arith.constant 0 : i32
    %c0_i32_1 = arith.constant 0 : i32
    return %c0_i32, %c0_i32_0 : i32, i32
  }
  func.func @transform_5(%arg0: i32) -> (i32, i32) {
    %c0_i32 = arith.constant 0 : i32
    %c0_i32_0 = arith.constant 0 : i32
    %c0_i32_1 = arith.constant 0 : i32
    return %c0_i32, %c0_i32_0 : i32, i32
  }
  func.func @transform_6(%arg0: i32) -> (i32, i32) {
    %c0_i32 = arith.constant 0 : i32
    %c0_i32_0 = arith.constant 0 : i32
    %c0_i32_1 = arith.constant 0 : i32
    return %c0_i32, %c0_i32_0 : i32, i32
  }
  func.func @transform_7(%arg0: i32) -> (i32, i32) {
    %c0_i32 = arith.constant 0 : i32
    %c0_i32_0 = arith.constant 0 : i32
    %c0_i32_1 = arith.constant 0 : i32
    return %c0_i32, %c0_i32_0 : i32, i32
  }
  func.func @transform_8(%arg0: i32) -> (i32, i32) {
    %c0_i32 = arith.constant 0 : i32
    %c0_i32_0 = arith.constant 0 : i32
    %c0_i32_1 = arith.constant 0 : i32
    return %c0_i32, %c0_i32_0 : i32, i32
  }
  func.func @transform_9(%arg0: i32) -> (i32, i32) {
    %c0_i32 = arith.constant 0 : i32
    %c0_i32_0 = arith.constant 0 : i32
    %c0_i32_1 = arith.constant 0 : i32
    return %c0_i32, %c0_i32_0 : i32, i32
  }
  func.func @transform_10(%arg0: i32) -> (i32, i32) {
    %c0_i32 = arith.constant 0 : i32
    %c0_i32_0 = arith.constant 0 : i32
    return %arg0, %c0_i32 : i32, i32
  }
}

</mosaic_0001>

<bundles_post_ra>
// kernel: tpu_custom_call.1
= control target key start
LH: loop header
LB: loop body
LE: loop exit
PB: predicated region body
PF: predicated region fallthrough
CT: control target
= control target key end

     0   :  { %15 = vsyncpa [#allocation3], 0  ;;  %s487_s0 = inlined_call_operand.vmem [shape: f32[8,4], index: 0, kind: input, shape index: {}]   ;;  %s488_s1 = inlined_call_operand.vmem [shape: f32[8,32], index: 1, kind: input, shape index: {}]   ;;  %s489_s2 = inlined_call_operand.vmem [shape: f32[4,32], index: 2, kind: input, shape index: {}]   ;;  %s490_s3 = inlined_call_operand.vmem [shape: f32[1,32], index: 3, kind: input, shape index: {}]   ;;  %s491_s4 = inlined_call_operand.hbm [shape: f32[32,32], index: 4, kind: input, shape index: {}]   ;;  %s492_s5 = inlined_call_operand.vmem [shape: f32[1,32], index: 5, kind: input, shape index: {}]   ;;  %s493_s6 = inlined_call_operand.hbm [shape: f32[32,32], index: 6, kind: input, shape index: {}]   ;;  %s494_s7 = inlined_call_operand.vmem [shape: f32[1,32], index: 7, kind: input, shape index: {}]   ;;  %s495_s8 = inlined_call_operand.hbm [shape: f32[32,128], index: 8, kind: input, shape index: {}]   ;;  %s496_s9 = inlined_call_operand.vmem [shape: f32[1,128], index: 9, kind: input, shape index: {}]   ;;  %s497_s10 = inlined_call_operand.hbm [shape: f32[8,128], index: 10, kind: output, shape index: {}]  }
   0x1   :  { %16 = vsyncpa [#allocation6], 0 }
   0x2   :  { %17 = vsyncpa [#allocation4], 0  ;;  %s45_s15 = sshll.u32 %s493_s6, 4  ;;  %s389_s16 = smov [#allocation5]   ;;  %s46_s15 = int_to_ptr.hbm [resolvable:$true] %s45_s15 }
   0x3   :  { %s47_s17 = sshll.u32 %s389_s16, 4  ;;  %s30_s20 = sshll.u32 %s491_s4, 4  ;;  %s48_s17 = int_to_ptr.vmem [resolvable:$true] %s47_s17  ;;  %s31_s20 = int_to_ptr.hbm [resolvable:$true] %s30_s20 }
   0x4   :  { %s390_s21 = smov 128   ;;  %s391_s22 = smov 8  }
   0x5   :  { %53 = dma.hbm_to_vmem [thread:$0]  %s46_s15, 512, %s48_s17, [#allocation6], %s390_s21, %s390_s21, %s391_s22  }
   0x6   :  { %s392_s23 = smov [#allocation2]   ;;  %s60_s27 = sshll.u32 %s495_s8, 4  ;;  %s61_s27 = int_to_ptr.hbm [resolvable:$true] %s60_s27 }
   0x7   :  { %s32_s24 = sshll.u32 %s392_s23, 4  ;;  %s393_s6 = smov [#allocation7]   ;;  %s33_s24 = int_to_ptr.vmem [resolvable:$true] %s32_s24 }
   0x8   :  { %38 = dma.hbm_to_vmem [thread:$0]  %s31_s20, 512, %s33_s24, [#allocation3], %s390_s21, %s390_s21, %s391_s22  }
   0x9   :  { %s62_s28 = sshll.u32 %s393_s6, 4  ;;  %s63_s28 = int_to_ptr.vmem [resolvable:$true] %s62_s28 }
   0xa   :  { %68 = dma.hbm_to_vmem [thread:$0]  %s61_s27, 512, %s63_s28, [#allocation6], %s390_s21, %s390_s21, %s391_s22  }
   0xb   :  { %383 = dma.done.wait [#allocation3], 512  }
   0xc   :  { %384 = vsyncadd [#allocation3], 4294966784 }
   0xd   :  { %385 = dma.done.wait [#allocation6], 1024  }
   0xe   :  { %386 = vsyncadd [#allocation6], 4294966272  ;;  %vm89_vm0 = vcmask 1043456   ;;  %vm85_vm1 = vcmask 31744   ;;  %v84_v0 = vld [vmem:[%s489_s2] sm:$0xf] }
   0xf   :  { %v83_v1 = vld [vmem:[%s487_s0] sm:$0xff]  ;;  %264 = vmatpush.msk.msra.mxu0 %vm89_vm0, %v84_v0  ;;  %v130_v2 = vld [vmem:[#allocation2 + $0x18] sm:$0xff]  ;;  %v129_v3 = vld [vmem:[#allocation2 + $0x10] sm:$0xff]  ;;  %vm135_vm2 = vcmask 261120   ;;  %v394_v16 = vmov 0.0   ;;  %s253_s18 = sshll.u32 %s497_s10, 4  ;;  %s254_s18 = int_to_ptr.hbm [resolvable:$true] %s253_s18 }
  0x10   :  { %265 = vmatmul.msk.f32.vlgmr.msra.gmra.mxu0 %vm85_vm1, %v83_v1  ;;  %151 = vmatpush.msra.mxu1 %v130_v2  ;;  %v128_v4 = vld [vmem:[#allocation2 + $0x8] sm:$0xff]  ;;  %v127_v5 = vld [vmem:[#allocation2] sm:$0xff]  ;;  %v163_v6 = vld [vmem:[#allocation5 + $0x18] sm:$0xff] }
  0x11   :  { %183 = vmatpush.msra.mxu2 %v163_v6  ;;  %v277_v7 = vld [vmem:[%s490_s3] ss:$0 sm:$0xff]  ;;  %v162_v18 = vld [vmem:[#allocation5 + $0x10] sm:$0xff]  ;;  %v161_v19 = vld [vmem:[#allocation5 + $0x8] sm:$0xff] }
  0x12   :  { %152 = vmatpush.msra.mxu1 %v129_v3  ;;  %v123_v14 = vld [vmem:[%s488_s1] sm:$0xff]  ;;  %v195_v21 = vld [vmem:[#allocation7 + $0x18] sm:$0xff]  ;;  %v194_v26 = vld [vmem:[#allocation7 + $0x10] sm:$0xff] }
  0x13   :  { %184 = vmatpush.msra.mxu2 %v162_v18  ;;  %v160_v20 = vld [vmem:[#allocation5] sm:$0xff]  ;;  %215 = vmatpush.msra.mxu3 %v195_v21  ;;  %v193_v27 = vld [vmem:[#allocation7 + $0x8] sm:$0xff] }
  0x14   :  { %153 = vmatpush.msra.mxu1 %v128_v4  ;;  %v278_v22 = vld [vmem:[%s492_s5] ss:$0 sm:$0xff] }
  0x15   :  { %185 = vmatpush.msra.mxu2 %v161_v19  ;;  %216 = vmatpush.msra.mxu3 %v194_v26  ;;  %v192_v28 = vld [vmem:[#allocation7] sm:$0xff] }
  0x16   :  { %154 = vmatpush.msra.mxu1 %v127_v5  ;;  %v279_v29 = vld [vmem:[%s494_s7] ss:$0 sm:$0xff]  ;;  %s395_s7 = smov [#allocation8]  }
  0x17   :  { %186 = vmatpush.msra.mxu2 %v160_v20  ;;  %217 = vmatpush.msra.mxu3 %v193_v27  ;;  %v280_v33 = vld [vmem:[%s496_s9] ss:$0 sm:$0xff]  ;;  %s251_s9 = sshll.u32 %s395_s7, 4  ;;  %s252_s9 = int_to_ptr.vmem [resolvable:$true] %s251_s9 }
  0x19   :  { %218 = vmatpush.msra.mxu3 %v192_v28 }
  0x8d   :  { %v110_v8 = vpop.f32.mrf.mxu0 }
  0x8e   :  { %v117_v9 = vsub.f32 %v110_v8, %v277_v7 }
  0x90   :  { %v118_v10 = vmul.f32 %v117_v9, %v117_v9 }
  0x92   :  { %v119_v11 = vsub.f32 0.0, %v118_v10 }
  0x94   :  { %v120_v12 = vmul.f32 2.0, %v119_v11 }
  0x96   :  { %v121_v13 = vmul.f32 1.442695, %v120_v12 }
  0x98   :  { %281 = vpow2.f32 %v121_v13 }
  0x9e   :  { %v282_v15 = vpop.eup %281 }
  0x9f   :  { %vm124_vm3 = vcmp.lt.f32.partialorder %v123_v14, %v282_v15 }
  0xa0   :  { %v266_v17 = vsel %vm124_vm3, 1.0, %v394_v16 }
  0xa1   :  { %267 = vmatmul.msk.f32.vlgmr.msra.gmra.mxu1 %vm135_vm2, %v266_v17 }
 0x11e   :  { %v156_v23 = vpop.f32.mrf.mxu1 }
 0x11f   :  { %v157_v24 = vadd.f32 %v278_v22, %v156_v23 }
 0x121   :  { %v159_v25 = vmax.f32 %v157_v24, 0.0 }
 0x123   :  { %268 = vmatmul.msk.f32.vlgmr.msra.gmra.mxu2 %vm135_vm2, %v159_v25 }
 0x1a6   :  { %v188_v30 = vpop.f32.mrf.mxu2 }
 0x1a7   :  { %v189_v31 = vadd.f32 %v279_v29, %v188_v30 }
 0x1a9   :  { %v191_v32 = vmax.f32 %v189_v31, 0.0 }
 0x1ab   :  { %269 = vmatmul.msk.f32.vlgmr.msra.gmra.mxu3 %vm135_vm2, %v191_v32 }
 0x22e   :  { %v220_v34 = vpop.f32.mrf.mxu3 }
 0x22f   :  { %v221_v35 = vadd.f32 %v280_v33, %v220_v34 }
 0x231   :  { %223 = vmax.xlane.f32.xlu0 %v221_v35 }
 0x2a4   :  { %v224_v36 = vpop.xlane.xlu0 %223 }
 0x2a5   :  { %v225_v37 = vsub.f32 %v221_v35, %v224_v36 }
 0x2a7   :  { %v226_v38 = vmul.f32 1.442695, %v225_v37 }
 0x2a9   :  { %283 = vpow2.f32 %v226_v38 }
 0x2af   :  { %v284_v39 = vpop.eup %283 }
 0x2b0   :  { %228 = vadd.xlane.f32.xlu0 %v284_v39 }
 0x323   :  { %v229_v40 = vpop.xlane.xlu0 %228 }
 0x324   :  { %285 = vrcp.f32 %v229_v40  ;;  %v241_v44 = vand.u32 2147483648, %v229_v40  ;;  %v239_v46 = vand.u32 2147483647, %v229_v40  ;;  %vm235_vm5 = vweird.f32 %v229_v40 }
 0x326   :  { %v242_v48 = vor.u32 1.1754944e-38, %v241_v44  ;;  %vm240_vm7 = vcmp.eq.f32.partialorder %v239_v46, 8.507059e+37 }
 0x32a   :  { %v286_v41 = vpop.eup %285 }
 0x32b   :  { %v231_v42 = vmul.f32 %v286_v41, %v229_v40  ;;  %vm236_vm4 = vweird.f32 %v286_v41 }
 0x32c   :  { %vm237_vm6 = vmor %vm235_vm5, %vm236_vm4 }
 0x32d   :  { %v232_v43 = vsub.f32 1.0, %v231_v42 }
 0x32f   :  { %v233_v45 = vmul.f32 %v286_v41, %v232_v43 }
 0x331   :  { %v234_v47 = vadd.f32 %v286_v41, %v233_v45 }
 0x333   :  { %v238_v49 = vsel %vm237_vm6, %v286_v41, %v234_v47 }
 0x334   :  { %v243_v50 = vsel %vm240_vm7, %v242_v48, %v238_v49 }
 0x335   :  { %v244_v51 = vmul.f32 %v284_v39, %v243_v50 }
 0x337   :  { %245 = vst [vmem:[#allocation8] sm:$0xff] %v244_v51 }
 0x338   :  { %256 = dma.vmem_to_hbm [thread:$0]  %s252_s9, 128, %s254_s18, [#allocation4]  }
 0x339   :  { %387 = dma.done.wait [#allocation4], 128  }
 0x33a   :  { %388 = vsyncadd [#allocation4], 4294967168 }
 0x33b   :  { %261 = vsyncpa [#allocation3], 1 }
 0x33c   :  { %262 = vsyncpa [#allocation6], 1 }
 0x33d   :  { %263 = vsyncpa [#allocation4], 1 }

</bundles_post_ra>
